<compile_context>
chip_gen: v5e
topology: v5e:2x2
jax: 0.10.0
libtpu: 0.0.40
codegen_flags: <defaults>
</compile_context>

<pallas_src>
import functools

import jax
import jax.numpy as jnp
from jax import lax
from jax.experimental import pallas as pl
from jax.experimental.pallas import tpu as pltpu


# ----------------------------------------------------------------------------
# Kernels
# ----------------------------------------------------------------------------

def _layernorm_relu_epilogue(v, musig_ref, internal_ref, out_ref,
                             approx_reciprocal):
    """LayerNorm (eps after sqrt) + ReLU(x + internal) epilogue on f32 `v`."""
    mu_p = musig_ref[0]
    sig_p = musig_ref[1]
    mean = jnp.mean(v, axis=-1, keepdims=True)
    centered = v - mean                                   # reused (single pass)
    sigma = jnp.sqrt(jnp.mean(centered * centered, axis=-1, keepdims=True)) + 1e-4
    inv_sigma = pl.reciprocal(sigma, approx=approx_reciprocal)   # EUP slot
    x_norm = centered * (inv_sigma * sig_p) + mu_p
    out_ref[...] = jnp.maximum(
        x_norm + internal_ref[...].astype(jnp.float32), 0.0
    ).astype(out_ref.dtype)


def _rnn_cell_kernel_single_k(musig_ref, xh_ref, w_ref, internal_ref, out_ref,
                              *, approx_reciprocal):
    """nk == 1 fast path: one fused matmul, epilogue straight to out_ref."""
    v = lax.dot_general(
        xh_ref[...], w_ref[...],
        dimension_numbers=(((1,), (0,)), ((), ())),
        preferred_element_type=jnp.float32)
    _layernorm_relu_epilogue(v, musig_ref, internal_ref, out_ref,
                             approx_reciprocal)


def _rnn_cell_kernel_multi_k(musig_ref, xh_ref, w_ref, internal_ref, out_ref,
                             acc_ref, *, approx_reciprocal):
    """Grid = (batch_tiles, k_tiles). K is the reduction axis (output-resident
    f32 accumulator); LayerNorm + ReLU runs in the finalize branch."""
    k = pl.program_id(1)

    partial = lax.dot_general(
        xh_ref[...], w_ref[...],
        dimension_numbers=(((1,), (0,)), ((), ())),
        preferred_element_type=jnp.float32)

    @pl.when(k == 0)
    def _first():
        acc_ref[...] = partial          # direct store: no zero-fill + read

    @pl.when(k > 0)
    def _accum():
        acc_ref[...] += partial

    @pl.when(k == pl.num_programs(1) - 1)
    def _finalize():
        _layernorm_relu_epilogue(acc_ref[...], musig_ref, internal_ref, out_ref,
                                 approx_reciprocal)


# ----------------------------------------------------------------------------
# Weight fusion (done ONCE outside any time loop)
# ----------------------------------------------------------------------------

def fuse_weights(weight_ih, weight_hh, compute_dtype=None, k_pad_multiple=256):
    """Fuse [W_ih | W_hh], zero-pad K to a multiple of `k_pad_multiple`, and
    pre-transpose to [K_padded, hidden] so the kernel uses a plain (1,0)
    contraction (no per-tile transpose on the MXU path).

    Call this ONCE outside the per-timestep loop: the concat / pad / transpose
    / dtype cast amortize across every RNN step.
    """
    w = jnp.concatenate([weight_ih, weight_hh], axis=1)    # [hidden, in+hidden]
    k_raw = w.shape[1]
    k_padded = ((k_raw + k_pad_multiple - 1) // k_pad_multiple) * k_pad_multiple
    if k_padded != k_raw:
        w = jnp.pad(w, ((0, 0), (0, k_padded - k_raw)))    # zero cols: inert
    w = w.T                                                # [K_padded, hidden]
    if compute_dtype is not None:
        w = w.astype(compute_dtype)
    return w


# ----------------------------------------------------------------------------
# Generation-aware tiling / VMEM budgets
# ----------------------------------------------------------------------------

def _vmem_budgets():
    """Returns (per-buffer weight-tile budget, scoped-VMEM cap) in bytes."""
    cap = None
    try:
        info = pltpu.get_tpu_info()
        cap = int(getattr(info, "vmem_capacity_bytes", 0)) or None
    except Exception:
        cap = None
    if cap is None:
        cap = 64 << 20                      # conservative: assume v7x
    if cap >= (96 << 20):                   # v5e / v6e: 128 MiB physical VMEM
        return 24 << 20, 100 << 20
    # v7x: 64 MiB per TC -> leave headroom for Mosaic scratch / semaphores.
    return 10 << 20, 52 << 20


def _pick_tk(k_padded, hidden, itemsize, budget_bytes):
    """Largest K tile (aligned, dividing k_padded) under the per-buffer budget."""
    if k_padded * hidden * itemsize <= budget_bytes:
        return k_padded
    step = 256 if k_padded % 256 == 0 else 128
    t_max = max((budget_bytes // (hidden * itemsize)) // step * step, step)
    t = min((k_padded // step) * step, t_max)
    while t >= step:
        if k_padded % t == 0:
            return int(t)
        t -= step
    return step


def _pick_tb(batch, per_row_bytes, budget_bytes):
    """Largest batch tile that fits the activation budget (nb kept minimal so
    the weight matrix is streamed from HBM as few times as possible)."""
    if batch * per_row_bytes <= budget_bytes:
        return batch
    for tb in range(batch - 1, 7, -1):
        if batch % tb == 0 and tb % 8 == 0 and tb * per_row_bytes <= budget_bytes:
            return tb
    for tb in range(8, batch, 8):           # smallest layout-friendly divisor
        if batch % tb == 0:
            return tb
    return batch                             # full-dim block is always legal


# ----------------------------------------------------------------------------
# Wrapper
# ----------------------------------------------------------------------------

def layernorm_rnn_cell_step(inp, internal, hx, w_fused, musig=(0.0, 1.0), *,
                            approx_reciprocal=False, max_k_tile=None):
    """One LayerNormRNNCell step given pre-fused [K_padded, hidden] weights.

    The compute dtype is defined by `w_fused.dtype` (never silently cast per
    step).  Returns (hy, (hy,)).
    """
    batch, input_size = inp.shape
    k_padded, hidden = w_fused.shape
    assert hx.shape == (batch, hidden)
    assert internal.shape == (batch, hidden)
    k_raw = input_size + hidden
    assert k_padded >= k_raw and k_padded % 128 == 0, (
        "w_fused must come from fuse_weights() ([K_padded, hidden] layout)")

    out_dtype = inp.dtype
    cdt = jnp.dtype(w_fused.dtype)

    # Fused activation [x | hx | 0-pad]: one K=(in+hid) MXU matmul instead of
    # two mostly-fill/drain skinny ones.
    parts = [inp.astype(cdt), hx.astype(cdt)]
    if k_padded > k_raw:
        parts.append(jnp.zeros((batch, k_padded - k_raw), cdt))
    xh = jnp.concatenate(parts, axis=1)

    # bf16 path: halve internal's DMA bytes (epilogue upcasts to f32 anyway).
    if internal.dtype.itemsize > cdt.itemsize:
        internal = internal.astype(cdt)

    weight_budget, vmem_cap = _vmem_budgets()
    tk = _pick_tk(k_padded, hidden, cdt.itemsize, weight_budget)
    if max_k_tile is not None:
        tk = min(tk, int(max_k_tile))
        assert k_padded % tk == 0
    nk = k_padded // tk

    weight_buf_bytes = tk * hidden * cdt.itemsize
    per_row_bytes = (2 * tk * cdt.itemsize                         # xh (x2 buf)
                     + hidden * internal.dtype.itemsize            # internal
                     + 2 * hidden * jnp.dtype(out_dtype).itemsize  # out (x2 buf)
                     + (hidden * 4 if nk > 1 else 0))              # f32 acc
    act_budget = max(vmem_cap - 2 * weight_buf_bytes - (8 << 20), 4 << 20)
    tb = _pick_tb(batch, per_row_bytes, act_budget)
    nb = batch // tb

    est = (2 * (tb * tk * cdt.itemsize + weight_buf_bytes)
           + 2 * tb * hidden * internal.dtype.itemsize
           + 2 * tb * hidden * jnp.dtype(out_dtype).itemsize
           + (tb * hidden * 4 if nk > 1 else 0))
    vmem_limit = int(min(max(est + (4 << 20), 32 << 20), vmem_cap))

    musig_arr = jnp.asarray(musig, dtype=jnp.float32)   # SMEM-resident scalars

    if nk == 1:
        kernel = functools.partial(_rnn_cell_kernel_single_k,
                                   approx_reciprocal=approx_reciprocal)
        grid_spec = pltpu.PrefetchScalarGridSpec(
            num_scalar_prefetch=0,
            grid=(nb,),
            in_specs=[
                pl.BlockSpec(memory_space=pltpu.MemorySpace.SMEM),      # musig
                pl.BlockSpec((tb, k_padded), lambda b: (b, 0)),         # [x|hx]
                pl.BlockSpec((k_padded, hidden), lambda b: (0, 0)),     # weights
                pl.BlockSpec((tb, hidden), lambda b: (b, 0)),           # internal
            ],
            out_specs=pl.BlockSpec((tb, hidden), lambda b: (b, 0)),
            scratch_shapes=[],
        )
        dim_sem = ("parallel",)
    else:
        kernel = functools.partial(_rnn_cell_kernel_multi_k,
                                   approx_reciprocal=approx_reciprocal)
        grid_spec = pltpu.PrefetchScalarGridSpec(
            num_scalar_prefetch=0,
            grid=(nb, nk),
            in_specs=[
                pl.BlockSpec(memory_space=pltpu.MemorySpace.SMEM),      # musig
                pl.BlockSpec((tb, tk), lambda b, k: (b, k)),            # [x|hx]
                pl.BlockSpec((tk, hidden), lambda b, k: (k, 0)),        # weights
                pl.BlockSpec((tb, hidden), lambda b, k: (b, 0)),        # internal
            ],
            out_specs=pl.BlockSpec((tb, hidden), lambda b, k: (b, 0)),
            scratch_shapes=[pltpu.VMEM((tb, hidden), jnp.float32)],
        )
        dim_sem = ("parallel", "arbitrary")

    hy = pl.pallas_call(
        kernel,
        out_shape=jax.ShapeDtypeStruct((batch, hidden), out_dtype),
        grid_spec=grid_spec,
        compiler_params=pltpu.CompilerParams(
            dimension_semantics=dim_sem,
            vmem_limit_bytes=vmem_limit),
    )(musig_arr, xh, w_fused, internal)

    return hy, (hy,)


def layernorm_rnn_cell(inp, internal, hx, weight_ih, weight_hh,
                       musig=(0.0, 1.0), *, compute_dtype=None,
                       approx_reciprocal=False):
    """Convenience wrapper mirroring LayerNormRNNCell.forward.

    For multi-step RNNs, call fuse_weights() once outside the time loop and
    use layernorm_rnn_cell_step per step instead.
    """
    w_fused = fuse_weights(weight_ih, weight_hh, compute_dtype)
    return layernorm_rnn_cell_step(inp, internal, hx, w_fused, musig,
                                   approx_reciprocal=approx_reciprocal)


# ----------------------------------------------------------------------------
# Reference + tests
# ----------------------------------------------------------------------------

def _reference(inp, internal, hx, weight_ih, weight_hh, musig=(0.0, 1.0)):
    """Pure-JAX reference mirroring the PyTorch module."""
    v = inp @ weight_ih.T + hx @ weight_hh.T
    mu = jnp.mean(v, axis=-1, keepdims=True)
    sigma = jnp.sqrt(jnp.mean((v - mu) ** 2, axis=-1, keepdims=True)) + 1e-4
    x = (v - mu) / sigma * musig[1] + musig[0]
    return jnp.maximum(x + internal, 0.0)


if __name__ == "__main__":
    key = jax.random.PRNGKey(0)
    keys = jax.random.split(key, 10)

    # ---- Test 1: small shapes, f32, single-K fast path -----------------
    B, input_size, hidden_size = 8, 64, 128
    rootk = (1.0 / hidden_size) ** 0.5
    weight_ih = jax.random.uniform(keys[0], (hidden_size, input_size),
                                   jnp.float32, -rootk, rootk)
    weight_hh = jax.random.uniform(keys[1], (hidden_size, hidden_size),
                                   jnp.float32, -rootk, rootk)
    x = jax.random.normal(keys[2], (B, input_size), jnp.float32)
    internal = jax.random.normal(keys[3], (B, hidden_size), jnp.float32)
    hx = jax.random.normal(keys[4], (B, hidden_size), jnp.float32)

    ref = _reference(x, internal, hx, weight_ih, weight_hh)

    hy, (state_hy,) = layernorm_rnn_cell(x, internal, hx, weight_ih, weight_hh)
    hy = jax.block_until_ready(hy)
    assert hy.shape == (B, hidden_size)
    assert jnp.allclose(hy, ref, atol=1e-4, rtol=1e-4), "f32 mismatch vs reference"
    assert jnp.allclose(state_hy, hy), "state output mismatch"

    # ---- Test 2: bf16 weights/activations, f32 accum, approx reciprocal ----
    hy_bf16, _ = layernorm_rnn_cell(x, internal, hx, weight_ih, weight_hh,
                                    compute_dtype=jnp.bfloat16,
                                    approx_reciprocal=True)
    hy_bf16 = jax.block_until_ready(hy_bf16)
    assert jnp.allclose(hy_bf16, ref, atol=5e-2, rtol=5e-2), "bf16 mismatch"

    # ---- Test 3: force the multi-K (accumulator) path -------------------
    input_size2 = 384                       # K = 384 + 128 = 512 -> two 256 tiles
    weight_ih2 = jax.random.uniform(keys[5], (hidden_size, input_size2),
                                    jnp.float32, -rootk, rootk)
    weight_hh2 = jax.random.uniform(keys[6], (hidden_size, hidden_size),
                                    jnp.float32, -rootk, rootk)
    x2 = jax.random.normal(keys[7], (B, input_size2), jnp.float32)
    internal2 = jax.random.normal(keys[8], (B, hidden_size), jnp.float32)
    hx2 = jax.random.normal(keys[9], (B, hidden_size), jnp.float32)

    ref2 = _reference(x2, internal2, hx2, weight_ih2, weight_hh2)
    w_fused2 = fuse_weights(weight_ih2, weight_hh2)       # fuse once
    hy2, _ = layernorm_rnn_cell_step(x2, internal2, hx2, w_fused2,
                                     max_k_tile=256)      # -> nk = 2
    hy2 = jax.block_until_ready(hy2)
    assert jnp.allclose(hy2, ref2, atol=1e-4, rtol=1e-4), "multi-K mismatch"

    print("KERNEL_OK")
</pallas_src>

<mosaic_0001>
module attributes {stable_mosaic.version = 11 : i64} {
  func.func @_rnn_cell_kernel_single_k(%arg0: i32, %arg1: memref<2xf32, #tpu.memory_space<smem>>, %arg2: memref<8x256xf32, #tpu.memory_space<vmem>>, %arg3: memref<256x128xf32, #tpu.memory_space<vmem>>, %arg4: memref<8x128xf32, #tpu.memory_space<vmem>>, %arg5: memref<8x128xf32, #tpu.memory_space<vmem>>) attributes {dimension_semantics = [#tpu.dimension_semantics<parallel>], iteration_bounds = array<i64: 1>, scalar_prefetch = 0 : i64, scratch_operands = 0 : i64, tpu.core_type = #tpu.core_type<tc>, window_params = [{transform_indices = @transform_0, window_bounds = array<i64: 2>}, {transform_indices = @transform_1, window_bounds = array<i64: 8, 256>}, {pipeline_mode = #tpu.pipeline_mode<synchronous>, transform_indices = @transform_2, window_bounds = array<i64: 256, 128>}, {transform_indices = @transform_3, window_bounds = array<i64: 8, 128>}, {transform_indices = @transform_4, window_bounds = array<i64: 8, 128>}]} {
    %c0 = arith.constant 0 : index
    %c0_0 = arith.constant 0 : index
    %0 = vector.load %arg2[%c0, %c0_0] : memref<8x256xf32, #tpu.memory_space<vmem>>, vector<8x256xf32>
    %c0_1 = arith.constant 0 : index
    %c0_2 = arith.constant 0 : index
    %1 = vector.load %arg3[%c0_1, %c0_2] : memref<256x128xf32, #tpu.memory_space<vmem>>, vector<256x128xf32>
    %cst = arith.constant dense<0.000000e+00> : vector<8x128xf32>
    %2 = tpu.matmul %0, %1, %cst {dimension_numbers = #tpu.dot_dimension_numbers<[1], [0], [0], [1], [0, 0, 1, 1], [], []>} : vector<8x256xf32>, vector<256x128xf32>, vector<8x128xf32> -> vector<8x128xf32>
    %c0_3 = arith.constant 0 : index
    %3 = memref.load %arg1[%c0_3] : memref<2xf32, #tpu.memory_space<smem>>
    %c1 = arith.constant 1 : index
    %4 = memref.load %arg1[%c1] : memref<2xf32, #tpu.memory_space<smem>>
    %cst_4 = arith.constant dense<0.000000e+00> : vector<8xf32>
    %5 = vector.multi_reduction <add>, %2, %cst_4 [1] : vector<8x128xf32> to vector<8xf32>
    %6 = vector.shape_cast %5 : vector<8xf32> to vector<8x1xf32>
    %cst_5 = arith.constant 1.280000e+02 : f32
    %7 = vector.broadcast %cst_5 : f32 to vector<8x1xf32>
    %8 = arith.divf %6, %7 : vector<8x1xf32>
    %9 = vector.broadcast %8 : vector<8x1xf32> to vector<8x128xf32>
    %10 = arith.subf %2, %9 : vector<8x128xf32>
    %11 = arith.mulf %10, %10 : vector<8x128xf32>
    %cst_6 = arith.constant dense<0.000000e+00> : vector<8xf32>
    %12 = vector.multi_reduction <add>, %11, %cst_6 [1] : vector<8x128xf32> to vector<8xf32>
    %13 = vector.shape_cast %12 : vector<8xf32> to vector<8x1xf32>
    %cst_7 = arith.constant 1.280000e+02 : f32
    %14 = vector.broadcast %cst_7 : f32 to vector<8x1xf32>
    %15 = arith.divf %13, %14 : vector<8x1xf32>
    %16 = math.sqrt %15 : vector<8x1xf32>
    %cst_8 = arith.constant 9.99999974E-5 : f32
    %17 = vector.broadcast %cst_8 : f32 to vector<8x1xf32>
    %18 = arith.addf %16, %17 : vector<8x1xf32>
    %19 = tpu.reciprocal %18 : vector<8x1xf32> -> vector<8x1xf32>
    %20 = vector.broadcast %4 : f32 to vector<8x1xf32>
    %21 = arith.mulf %19, %20 : vector<8x1xf32>
    %22 = vector.broadcast %21 : vector<8x1xf32> to vector<8x128xf32>
    %23 = arith.mulf %10, %22 : vector<8x128xf32>
    %24 = vector.broadcast %3 : f32 to vector<8x128xf32>
    %25 = arith.addf %23, %24 : vector<8x128xf32>
    %c0_9 = arith.constant 0 : index
    %c0_10 = arith.constant 0 : index
    %26 = vector.load %arg4[%c0_9, %c0_10] : memref<8x128xf32, #tpu.memory_space<vmem>>, vector<8x128xf32>
    %27 = arith.addf %25, %26 : vector<8x128xf32>
    %cst_11 = arith.constant 0.000000e+00 : f32
    %28 = vector.broadcast %cst_11 : f32 to vector<8x128xf32>
    %29 = arith.maximumf %27, %28 : vector<8x128xf32>
    %c0_12 = arith.constant 0 : index
    %c0_13 = arith.constant 0 : index
    %30 = vector.load %arg5[%c0_12, %c0_13] : memref<8x128xf32, #tpu.memory_space<vmem>>, vector<8x128xf32>
    tpu.vector_store %arg5[%c0_12, %c0_13], %29 {strides = array<i32>} : memref<8x128xf32, #tpu.memory_space<vmem>>, vector<8x128xf32>,
    return
  }
  func.func @transform_0(%arg0: i32) -> i32 {
    %c0_i32 = arith.constant 0 : i32
    %c0_i32_0 = arith.constant 0 : i32
    return %c0_i32 : i32
  }
  func.func @transform_1(%arg0: i32) -> (i32, i32) {
    %c0_i32 = arith.constant 0 : i32
    %c0_i32_0 = arith.constant 0 : i32
    return %arg0, %c0_i32 : i32, i32
  }
  func.func @transform_2(%arg0: i32) -> (i32, i32) {
    %c0_i32 = arith.constant 0 : i32
    %c0_i32_0 = arith.constant 0 : i32
    %c0_i32_1 = arith.constant 0 : i32
    return %c0_i32, %c0_i32_0 : i32, i32
  }
  func.func @transform_3(%arg0: i32) -> (i32, i32) {
    %c0_i32 = arith.constant 0 : i32
    %c0_i32_0 = arith.constant 0 : i32
    return %arg0, %c0_i32 : i32, i32
  }
  func.func @transform_4(%arg0: i32) -> (i32, i32) {
    %c0_i32 = arith.constant 0 : i32
    %c0_i32_0 = arith.constant 0 : i32
    return %arg0, %c0_i32 : i32, i32
  }
}

</mosaic_0001>

<bundles_post_ra>
// kernel: tpu_custom_call.1
= control target key start
LH: loop header
LB: loop body
LE: loop exit
PB: predicated region body
PF: predicated region fallthrough
CT: control target
= control target key end

     0   :  { %9 = vsyncpa [#allocation5], 0  ;;  %s399_s0 = inlined_call_operand.hbm [shape: f32[2], index: 0, kind: input, shape index: {}]   ;;  %s400_s1 = inlined_call_operand.hbm [shape: f32[8,256], index: 1, kind: input, shape index: {}]   ;;  %s401_s2 = inlined_call_operand.hbm [shape: f32[256,128], index: 2, kind: input, shape index: {}]   ;;  %s402_s3 = inlined_call_operand.hbm [shape: f32[8,128], index: 3, kind: input, shape index: {}]   ;;  %s403_s4 = inlined_call_operand.hbm [shape: f32[8,128], index: 4, kind: output, shape index: {}]  }
   0x1   :  { %10 = vsyncpa [#allocation3], 0 }
   0x2   :  { %11 = vsyncpa [#allocation8], 0  ;;  %s37_s17 = sshll.u32 %s401_s2, 4  ;;  %s38_s17 = int_to_ptr.hbm [resolvable:$true] %s37_s17 }
   0x3   :  { %12 = vsyncpa [#allocation4], 0  ;;  %s351_s18 = smov [#allocation7]   ;;  %s18_s22 = sshll.u32 %s399_s0, 4  ;;  %s19_s22 = int_to_ptr.hbm [resolvable:$true] %s18_s22 }
   0x4   :  { %s39_s19 = sshll.u32 %s351_s18, 4  ;;  %s352_s23 = smov 128   ;;  %s40_s19 = int_to_ptr.vmem [resolvable:$true] %s39_s19 }
   0x5   :  { %s353_s24 = smov 8   ;;  %s354_s25 = smov [#allocation2]  }
   0x6   :  { %45 = dma.hbm_to_vmem [thread:$0]  %s38_s17, 4096, %s40_s19, [#allocation8], %s352_s23, %s352_s23, %s353_s24  }
   0x7   :  { %21 = dma.hbm_to_smem %s19_s22, 16, %s354_s25, [#allocation5]  }
   0x8   :  { %s27_s28 = sshll.u32 %s400_s1, 4  ;;  %s355_s2 = smov [#allocation6]   ;;  %s28_s28 = int_to_ptr.hbm [resolvable:$true] %s27_s28 }
   0x9   :  { %s29_s29 = sshll.u32 %s355_s2, 4  ;;  %s51_s6 = sshll.u32 %s402_s3, 4  ;;  %s30_s29 = int_to_ptr.vmem [resolvable:$true] %s29_s29  ;;  %s52_s6 = int_to_ptr.hbm [resolvable:$true] %s51_s6 }
   0xa   :  { %32 = dma.hbm_to_vmem [thread:$0]  %s28_s28, 256, %s30_s29, [#allocation3]  }
   0xb   :  { %s356_s0 = smov [#allocation9]  }
   0xc   :  { %s53_s7 = sshll.u32 %s356_s0, 4  ;;  %s54_s7 = int_to_ptr.vmem [resolvable:$true] %s53_s7 }
   0xd   :  { %56 = dma.hbm_to_vmem [thread:$0]  %s52_s6, 128, %s54_s7, [#allocation8]  }
   0xe   :  { %343 = dma.done.wait [#allocation5], 16  }
   0xf   :  { %344 = vsyncadd [#allocation5], 4294967280 }
  0x10   :  { %345 = dma.done.wait [#allocation3], 256  }
  0x11   :  { %346 = vsyncadd [#allocation3], 4294967040 }
  0x12   :  { %347 = dma.done.wait [#allocation8], 4224  }
  0x13   :  { %348 = vsyncadd [#allocation8], 4294963072 }
  0x14   :  { %73 = sfence }
  0x15   :  { %v91_v0 = vld [vmem:[#allocation7 + $0x78] sm:$0xff]  ;;  %v90_v2 = vld [vmem:[#allocation7 + $0x70] sm:$0xff]  ;;  %v89_v4 = vld [vmem:[#allocation7 + $0x68] sm:$0xff]  ;;  %v357_v37 = vmov 128.0   ;;  %s220_s1 = sld [smem:[#allocation2 + $0x1]]  ;;  %s358_s8 = smov [#allocation10]  }
  0x16   :  { %v107_v1 = vld [vmem:[#allocation7 + $0xf8] sm:$0xff]  ;;  %108 = vmatpush.msra.mxu0 %v91_v0  ;;  %v106_v3 = vld [vmem:[#allocation7 + $0xf0] sm:$0xff]  ;;  %v105_v5 = vld [vmem:[#allocation7 + $0xe8] sm:$0xff]  ;;  %229 = vrcp.f32 %v357_v37  ;;  %s148_s3 = sld [smem:[#allocation2]]  ;;  %s206_s9 = sshll.u32 %s358_s8, 4  ;;  %s207_s9 = int_to_ptr.vmem [resolvable:$true] %s206_s9 }
  0x17   :  { %128 = vmatpush.msra.mxu1 %v107_v1  ;;  %v88_v6 = vld [vmem:[#allocation7 + $0x60] sm:$0xff]  ;;  %v87_v8 = vld [vmem:[#allocation7 + $0x58] sm:$0xff]  ;;  %v86_v10 = vld [vmem:[#allocation7 + $0x50] sm:$0xff]  ;;  %s208_s12 = sshll.u32 %s403_s4, 4  ;;  %s209_s12 = int_to_ptr.hbm [resolvable:$true] %s208_s12 }
  0x18   :  { %109 = vmatpush.msra.mxu0 %v90_v2  ;;  %v104_v7 = vld [vmem:[#allocation7 + $0xe0] sm:$0xff]  ;;  %v103_v9 = vld [vmem:[#allocation7 + $0xd8] sm:$0xff]  ;;  %v102_v11 = vld [vmem:[#allocation7 + $0xd0] sm:$0xff] }
  0x19   :  { %129 = vmatpush.msra.mxu1 %v106_v3  ;;  %v85_v12 = vld [vmem:[#allocation7 + $0x48] sm:$0xff]  ;;  %v84_v14 = vld [vmem:[#allocation7 + $0x40] sm:$0xff]  ;;  %v83_v16 = vld [vmem:[#allocation7 + $0x38] sm:$0xff] }
  0x1a   :  { %110 = vmatpush.msra.mxu0 %v89_v4  ;;  %v101_v13 = vld [vmem:[#allocation7 + $0xc8] sm:$0xff]  ;;  %v100_v15 = vld [vmem:[#allocation7 + $0xc0] sm:$0xff]  ;;  %v99_v17 = vld [vmem:[#allocation7 + $0xb8] sm:$0xff] }
  0x1b   :  { %130 = vmatpush.msra.mxu1 %v105_v5  ;;  %v82_v18 = vld [vmem:[#allocation7 + $0x30] sm:$0xff]  ;;  %v81_v20 = vld [vmem:[#allocation7 + $0x28] sm:$0xff]  ;;  %v80_v22 = vld [vmem:[#allocation7 + $0x20] sm:$0xff]  ;;  %v192_v5 = vstv %s220_s1 }
  0x1c   :  { %111 = vmatpush.msra.mxu0 %v88_v6  ;;  %v98_v19 = vld [vmem:[#allocation7 + $0xb0] sm:$0xff]  ;;  %v97_v21 = vld [vmem:[#allocation7 + $0xa8] sm:$0xff]  ;;  %v96_v23 = vld [vmem:[#allocation7 + $0xa0] sm:$0xff]  ;;  %v230_v38 = vpop.eup %229 }
  0x1d   :  { %131 = vmatpush.msra.mxu1 %v104_v7  ;;  %v79_v24 = vld [vmem:[#allocation7 + $0x18] sm:$0xff]  ;;  %v78_v26 = vld [vmem:[#allocation7 + $0x10] sm:$0xff]  ;;  %v77_v28 = vld [vmem:[#allocation7 + $0x8] sm:$0xff]  ;;  %v153_v39 = vmul.f32 128.0, %v230_v38  ;;  %vm157_vm0 = vweird.f32 %v230_v38 }
  0x1e   :  { %112 = vmatpush.msra.mxu0 %v87_v8  ;;  %v95_v25 = vld [vmem:[#allocation7 + $0x98] sm:$0xff]  ;;  %v94_v27 = vld [vmem:[#allocation7 + $0x90] sm:$0xff]  ;;  %v93_v29 = vld [vmem:[#allocation7 + $0x88] sm:$0xff] }
  0x1f   :  { %132 = vmatpush.msra.mxu1 %v103_v9  ;;  %v76_v30 = vld [vmem:[#allocation7] sm:$0xff]  ;;  %v74_v32 = vld [vmem:[#allocation6] sm:$0xff]  ;;  %v75_v33 = vld [vmem:[#allocation6 + $0x8] sm:$0xff]  ;;  %v154_v40 = vsub.f32 1.0, %v153_v39  ;;  %v195_v9 = vstv %s148_s3 }
  0x20   :  { %113 = vmatpush.msra.mxu0 %v86_v10  ;;  %v92_v31 = vld [vmem:[#allocation7 + $0x80] sm:$0xff] }
  0x21   :  { %133 = vmatpush.msra.mxu1 %v102_v11  ;;  %v155_v41 = vmul.f32 %v230_v38, %v154_v40  ;;  %v197_v11 = vld [vmem:[#allocation9] sm:$0xff] }
  0x22   :  { %114 = vmatpush.msra.mxu0 %v85_v12 }
  0x23   :  { %134 = vmatpush.msra.mxu1 %v101_v13  ;;  %v156_v42 = vadd.f32 %v230_v38, %v155_v41 }
  0x24   :  { %115 = vmatpush.msra.mxu0 %v84_v14 }
  0x25   :  { %135 = vmatpush.msra.mxu1 %v100_v15  ;;  %v158_v43 = vsel %vm157_vm0, %v230_v38, %v156_v42 }
  0x26   :  { %116 = vmatpush.msra.mxu0 %v83_v16 }
  0x27   :  { %136 = vmatpush.msra.mxu1 %v99_v17 }
  0x28   :  { %117 = vmatpush.msra.mxu0 %v82_v18 }
  0x29   :  { %137 = vmatpush.msra.mxu1 %v98_v19 }
  0x2a   :  { %118 = vmatpush.msra.mxu0 %v81_v20 }
  0x2b   :  { %138 = vmatpush.msra.mxu1 %v97_v21 }
  0x2c   :  { %119 = vmatpush.msra.mxu0 %v80_v22 }
  0x2d   :  { %139 = vmatpush.msra.mxu1 %v96_v23 }
  0x2e   :  { %120 = vmatpush.msra.mxu0 %v79_v24 }
  0x2f   :  { %140 = vmatpush.msra.mxu1 %v95_v25 }
  0x30   :  { %121 = vmatpush.msra.mxu0 %v78_v26 }
  0x31   :  { %141 = vmatpush.msra.mxu1 %v94_v27 }
  0x32   :  { %122 = vmatpush.msra.mxu0 %v77_v28 }
  0x33   :  { %142 = vmatpush.msra.mxu1 %v93_v29 }
  0x34   :  { %123 = vmatpush.msra.mxu0 %v76_v30 }
  0x35   :  { %143 = vmatpush.msra.mxu1 %v92_v31  ;;  %124 = vmatmul.f32.vlgmr.msra.gmra.mxu0 %v74_v32 }
  0x36   :  { %144 = vmatmul.f32.vlgmr.msra.gmra.mxu1 %v75_v33 }
  0xb2   :  { %v125_v34 = vpop.f32.mrf.mxu0 }
  0xb3   :  { %v145_v35 = vpop.f32.mrf.mxu1 }
  0xb4   :  { %v146_v36 = vadd.f32 %v145_v35, %v125_v34 }
  0xb6   :  { %150 = vadd.xlane.f32.xlu0 %v146_v36 }
 0x129   :  { %v151_v44 = vpop.xlane.xlu0 %150 }
 0x12a   :  { %v159_v45 = vmul.f32 %v158_v43, %v151_v44 }
 0x12c   :  { %v160_v46 = vsub.f32 %v146_v36, %v159_v45 }
 0x12e   :  { %v161_v47 = vmul.f32 %v160_v46, %v160_v46 }
 0x130   :  { %162 = vadd.xlane.f32.xlu0 %v161_v47 }
 0x1a3   :  { %v163_v48 = vpop.xlane.xlu0 %162 }
 0x1a4   :  { %v164_v49 = vmul.f32 %v163_v48, %v158_v43 }
 0x1a6   :  { %231 = vrsqrt.f32 %v164_v49  ;;  %vm172_vm1 = vcmp.eq.f32.partialorder %v164_v49, inf  ;;  %v175_v57 = vand.u32 2147483648, %v164_v49  ;;  %vm174_vm2 = vcmp.eq.f32.partialorder %v164_v49, 0.0 }
 0x1ac   :  { %v232_v50 = vpop.eup %231 }
 0x1ad   :  { %v166_v51 = vmul.f32 %v232_v50, %v164_v49 }
 0x1af   :  { %v167_v52 = vmul.f32 %v232_v50, %v166_v51 }
 0x1b1   :  { %v168_v53 = vmul.f32 0.5, %v167_v52 }
 0x1b3   :  { %v169_v54 = vsub.f32 1.5, %v168_v53 }
 0x1b5   :  { %v170_v55 = vmul.f32 %v232_v50, %v169_v54 }
 0x1b7   :  { %v171_v56 = vmul.f32 %v170_v55, %v164_v49 }
 0x1b9   :  { %v173_v58 = vsel %vm172_vm1, %v164_v49, %v171_v56 }
 0x1ba   :  { %v176_v59 = vsel %vm174_vm2, %v175_v57, %v173_v58 }
 0x1bb   :  { %v177_v60 = vadd.f32 0.0001, %v176_v59 }
 0x1bd   :  { %233 = vrcp.f32 %v177_v60  ;;  %v189_v0 = vand.u32 2147483648, %v177_v60  ;;  %v187_v2 = vand.u32 2147483647, %v177_v60  ;;  %vm183_vm4 = vweird.f32 %v177_v60 }
 0x1bf   :  { %v190_v4 = vor.u32 1.1754944e-38, %v189_v0  ;;  %vm188_vm6 = vcmp.eq.f32.partialorder %v187_v2, 8.507059e+37 }
 0x1c3   :  { %v234_v61 = vpop.eup %233 }
 0x1c4   :  { %v179_v62 = vmul.f32 %v234_v61, %v177_v60  ;;  %vm184_vm3 = vweird.f32 %v234_v61 }
 0x1c5   :  { %vm185_vm5 = vmor %vm183_vm4, %vm184_vm3 }
 0x1c6   :  { %v180_v63 = vsub.f32 1.0, %v179_v62 }
 0x1c8   :  { %v181_v1 = vmul.f32 %v234_v61, %v180_v63 }
 0x1ca   :  { %v182_v3 = vadd.f32 %v234_v61, %v181_v1 }
 0x1cc   :  { %v186_v6 = vsel %vm185_vm5, %v234_v61, %v182_v3 }
 0x1cd   :  { %v191_v7 = vsel %vm188_vm6, %v190_v4, %v186_v6 }
 0x1ce   :  { %v193_v8 = vmul.f32 %v192_v5, %v191_v7 }
 0x1d0   :  { %v194_v10 = vmul.f32 %v193_v8, %v160_v46 }
 0x1d2   :  { %v196_v12 = vadd.f32 %v195_v9, %v194_v10 }
 0x1d4   :  { %v198_v13 = vadd.f32 %v197_v11, %v196_v12 }
 0x1d6   :  { %v199_v14 = vmax.f32 %v198_v13, 0.0 }
 0x1d8   :  { %200 = vst [vmem:[#allocation10] sm:$0xff] %v199_v14 }
 0x1d9   :  { %211 = dma.vmem_to_hbm [thread:$0]  %s207_s9, 128, %s209_s12, [#allocation4]  }
 0x1da   :  { %349 = dma.done.wait [#allocation4], 128  }
 0x1db   :  { %350 = vsyncadd [#allocation4], 4294967168 }
 0x1dc   :  { %216 = vsyncpa [#allocation3], 1 }
 0x1dd   :  { %217 = vsyncpa [#allocation8], 1 }
 0x1de   :  { %218 = vsyncpa [#allocation4], 1 }
 0x1df   :  { %219 = vsyncpa [#allocation5], 1 }

</bundles_post_ra>
